<compile_context>
chip_gen: v7x
topology: tpu7x:2x2x1
jax: 0.10.0
libtpu: 0.0.40
codegen_flags: <defaults>
</compile_context>

<pallas_src>
import functools
import math
from typing import NamedTuple

import jax
import jax.numpy as jnp
from jax.experimental import pallas as pl
from jax.experimental.pallas import tpu as pltpu

ACTOR_NETWORK = {"FC1_DIMS": 64, "FC2_DIMS": 64}

LANES = 128
SUBLANES = 8


def _round_up(x, m):
    return (x + m - 1) // m * m


def _cdiv(a, b):
    return (a + b - 1) // b


class Layout(NamedTuple):
    """Row offsets of the packed parameter slab (all multiples of 8)."""
    d_in_p: int     # padded input feature dim (K of first matmul)
    width: int      # common lane-padded width of every layer output (>=128)
    rows: int       # total slab rows
    off_w1: int
    off_b1: int
    off_w2: int
    off_b2: int
    off_w3: int
    off_b3: int


class ActorParams(NamedTuple):
    slab: jax.Array        # (rows, width) bf16 packed weights + biases
    layout: Layout
    log_std: jax.Array     # (1, n_actions) f32
    n_actions: int
    input_dims: int


def make_layout(input_dims, n_actions):
    d_in_p = _round_up(max(input_dims, SUBLANES), SUBLANES)
    width = max(_round_up(ACTOR_NETWORK["FC1_DIMS"], LANES),
                _round_up(ACTOR_NETWORK["FC2_DIMS"], LANES),
                _round_up(n_actions, LANES))
    off_w1 = 0
    off_b1 = off_w1 + d_in_p
    off_w2 = off_b1 + SUBLANES
    off_b2 = off_w2 + width
    off_w3 = off_b2 + SUBLANES
    off_b3 = off_w3 + width
    rows = off_b3 + SUBLANES
    return Layout(d_in_p, width, rows,
                  off_w1, off_b1, off_w2, off_b2, off_w3, off_b3)


def pack_actor_params(w1, b1, w2, b2, w3, b3):
    """Pack (W,b) x 3 into one zero-padded, lane-aligned bf16 slab."""
    input_dims, fc1 = w1.shape
    fc2 = w2.shape[1]
    n_actions = w3.shape[1]
    L = make_layout(input_dims, n_actions)
    slab = jnp.zeros((L.rows, L.width), jnp.float32)
    slab = slab.at[L.off_w1:L.off_w1 + input_dims, :fc1].set(w1)
    slab = slab.at[L.off_b1, :fc1].set(b1.reshape(-1))
    slab = slab.at[L.off_w2:L.off_w2 + fc1, :fc2].set(w2)
    slab = slab.at[L.off_b2, :fc2].set(b2.reshape(-1))
    slab = slab.at[L.off_w3:L.off_w3 + fc2, :n_actions].set(w3)
    slab = slab.at[L.off_b3, :n_actions].set(b3.reshape(-1))
    return slab.astype(jnp.bfloat16), L


# ----------------------------- kernels --------------------------------------
def _mlp_mu(x_ref, p_ref, L):
    """Shared fused MLP body: tanh(relu(relu(x@W1+b1)@W2+b2)@W3+b3), f32."""
    f32, bf16 = jnp.float32, jnp.bfloat16
    x = x_ref[...]                                   # already bf16 (cast at pad)

    w1 = p_ref[L.off_w1:L.off_w1 + L.d_in_p, :]
    b1 = p_ref[L.off_b1:L.off_b1 + 1, :].astype(f32)
    h1 = jnp.maximum(jnp.dot(x, w1, preferred_element_type=f32) + b1, 0.0)

    w2 = p_ref[L.off_w2:L.off_w2 + L.width, :]
    b2 = p_ref[L.off_b2:L.off_b2 + 1, :].astype(f32)
    h2 = jnp.maximum(
        jnp.dot(h1.astype(bf16), w2, preferred_element_type=f32) + b2, 0.0)

    w3 = p_ref[L.off_w3:L.off_w3 + L.width, :]
    b3 = p_ref[L.off_b3:L.off_b3 + 1, :].astype(f32)
    return jnp.tanh(jnp.dot(h2.astype(bf16), w3, preferred_element_type=f32) + b3)


def _make_forward_kernel(L):
    def kernel(x_ref, p_ref, mu_ref):
        mu_ref[...] = _mlp_mu(x_ref, p_ref, L)
    return kernel


def _make_logprob_kernel(L, n_actions):
    log2pi = math.log(2.0 * math.pi)

    def kernel(x_ref, a_ref, ls_ref, p_ref, out_ref):
        mu = _mlp_mu(x_ref, p_ref, L)                          # (tile_b, width)
        # Normal(mu, std) log-prob; std math is (1, n_actions), computed once.
        std = jnp.clip(jnp.exp(ls_ref[...]), 0.001, 1.0)       # (1, A)
        inv2var = 1.0 / (2.0 * std * std)                      # once per tile
        const = -(jnp.log(std) + 0.5 * log2pi)                 # (1, A)
        diff = a_ref[...] - mu[:, :n_actions]                  # (tile_b, A)
        lp = jnp.sum(const - diff * diff * inv2var,
                     axis=-1, keepdims=True)                   # (tile_b, 1)
        # Pack lp into the spare lane `n_actions` of the mu slab -> ONE
        # lane-dense (tile_b, width) output store instead of a second slab.
        lane = jax.lax.broadcasted_iota(jnp.int32, mu.shape, 1)
        out_ref[...] = jnp.where(lane == n_actions, lp, mu)
    return kernel


# ----------------------------- cached pallas_call builders -------------------
@functools.lru_cache(maxsize=64)
def _build_forward_call(L: Layout, tile_b: int, num_tiles: int):
    b_pad = tile_b * num_tiles
    call = pl.pallas_call(
        _make_forward_kernel(L),
        out_shape=jax.ShapeDtypeStruct((b_pad, L.width), jnp.float32),
        grid=(num_tiles,),
        in_specs=[
            pl.BlockSpec((tile_b, L.d_in_p), lambda i: (i, 0)),
            pl.BlockSpec((L.rows, L.width), lambda i: (0, 0)),   # weights resident
        ],
        out_specs=pl.BlockSpec((tile_b, L.width), lambda i: (i, 0)),
        compiler_params=pltpu.CompilerParams(dimension_semantics=("parallel",)),
    )
    return jax.jit(call)


@functools.lru_cache(maxsize=64)
def _build_logprob_call(L: Layout, tile_b: int, num_tiles: int, n_actions: int):
    b_pad = tile_b * num_tiles
    call = pl.pallas_call(
        _make_logprob_kernel(L, n_actions),
        out_shape=jax.ShapeDtypeStruct((b_pad, L.width), jnp.float32),
        grid=(num_tiles,),
        in_specs=[
            pl.BlockSpec((tile_b, L.d_in_p), lambda i: (i, 0)),      # bf16 state
            pl.BlockSpec((tile_b, n_actions), lambda i: (i, 0)),     # narrow actions
            pl.BlockSpec((1, n_actions), lambda i: (0, 0)),          # log_std
            pl.BlockSpec((L.rows, L.width), lambda i: (0, 0)),       # weights resident
        ],
        out_specs=pl.BlockSpec((tile_b, L.width), lambda i: (i, 0)),
        compiler_params=pltpu.CompilerParams(dimension_semantics=("parallel",)),
    )
    return jax.jit(call)


# ----------------------------- wrappers --------------------------------------
def _pad2d(x, rows, cols, dtype=None):
    dtype = x.dtype if dtype is None else dtype
    b, c = x.shape
    if b == rows and c == cols and x.dtype == dtype:
        return x
    return jnp.zeros((rows, cols), dtype).at[:b, :c].set(x.astype(dtype))


@functools.lru_cache(maxsize=1)
def _num_tensorcores():
    """2 on megacore chips (v4 / v5p / v7x), else 1."""
    try:
        kind = jax.devices()[0].device_kind.lower()
    except Exception:
        return 1
    return 2 if any(t in kind for t in ("v4", "v5p", "v7")) else 1


def _batch_tiling(batch, max_tile_b, min_tiles):
    """tile_b ~ ceil(B/num_tiles) rounded to 8 (no 2x pad waste); >= min_tiles
    grid steps whenever each core gets at least one 8-row sublane group."""
    batch = max(int(batch), 1)
    num_tiles = _cdiv(batch, max_tile_b)
    if batch >= SUBLANES * min_tiles:
        num_tiles = max(num_tiles, min_tiles)
    tile_b = _round_up(_cdiv(batch, num_tiles), SUBLANES)
    num_tiles = max(_cdiv(batch, tile_b), 1)
    return tile_b, num_tiles, tile_b * num_tiles


def actor_forward(state, params: ActorParams, *, max_tile_b=2048):
    """mu = tanh(MLP(state)); state: (B, input_dims) -> (B, n_actions) f32."""
    L = params.layout
    B = state.shape[0]
    tile_b, num_tiles, b_pad = _batch_tiling(B, max_tile_b, _num_tensorcores())
    x = _pad2d(state, b_pad, L.d_in_p, jnp.bfloat16)
    mu_pad = _build_forward_call(L, tile_b, num_tiles)(x, params.slab)
    return mu_pad[:B, :params.n_actions]


def actor_get_log_prob(state, actions, params: ActorParams, *, max_tile_b=2048):
    """Fused forward + Normal log-prob. Returns (mu (B,A), log_prob (B,))."""
    L = params.layout
    A = params.n_actions
    assert A < L.width, "need a spare output lane to pack log_prob"
    B = state.shape[0]
    tile_b, num_tiles, b_pad = _batch_tiling(B, max_tile_b, _num_tensorcores())
    x = _pad2d(state, b_pad, L.d_in_p, jnp.bfloat16)
    a = _pad2d(actions, b_pad, A, jnp.float32)
    out = _build_logprob_call(L, tile_b, num_tiles, A)(
        x, a, params.log_std, params.slab)
    return out[:B, :A], out[:B, A]


def get_entropy(state, params: ActorParams):
    # Normal entropy is independent of mu -> plain JAX glue, no kernel needed.
    std = jnp.clip(jnp.exp(params.log_std), 0.001, 1.0)
    ent = 0.5 + 0.5 * math.log(2.0 * math.pi) + jnp.log(std)
    B = state.shape[0]
    return jnp.mean(jnp.broadcast_to(ent, (B, params.n_actions)))


# ----------------------------- init + references -----------------------------
def init_linear(key, fan_in, fan_out):
    """PyTorch nn.Linear default init: uniform(+-1/sqrt(fan_in))."""
    kw, kb = jax.random.split(key)
    bound = 1.0 / math.sqrt(fan_in)
    w = jax.random.uniform(kw, (fan_in, fan_out), jnp.float32, -bound, bound)
    b = jax.random.uniform(kb, (fan_out,), jnp.float32, -bound, bound)
    return w, b


def init_actor_params(key, input_dims, n_actions, action_std_init=0.5):
    k1, k2, k3 = jax.random.split(key, 3)
    w1, b1 = init_linear(k1, input_dims, ACTOR_NETWORK["FC1_DIMS"])
    w2, b2 = init_linear(k2, ACTOR_NETWORK["FC1_DIMS"], ACTOR_NETWORK["FC2_DIMS"])
    w3, b3 = init_linear(k3, ACTOR_NETWORK["FC2_DIMS"], n_actions)
    slab, layout = pack_actor_params(w1, b1, w2, b2, w3, b3)
    log_std = jnp.full((1, n_actions), math.log(action_std_init), jnp.float32)
    params = ActorParams(slab=slab, layout=layout, log_std=log_std,
                         n_actions=n_actions, input_dims=input_dims)
    raw = (w1, b1, w2, b2, w3, b3)   # kept only for the pure-JAX reference
    return params, raw


def actor_forward_ref_f32(state, raw):
    w1, b1, w2, b2, w3, b3 = raw
    h1 = jnp.maximum(state @ w1 + b1, 0.0)
    h2 = jnp.maximum(h1 @ w2 + b2, 0.0)
    return jnp.tanh(h2 @ w3 + b3)


def actor_forward_ref_bf16(state, raw):
    """Reference matching the kernel's bf16-input / f32-accumulate matmuls."""
    w1, b1, w2, b2, w3, b3 = raw
    bf = jnp.bfloat16

    def lin(x, w, b):
        return (jnp.dot(x.astype(bf), w.astype(bf),
                        preferred_element_type=jnp.float32)
                + b.astype(bf).astype(jnp.float32))

    h1 = jnp.maximum(lin(state, w1, b1), 0.0)
    h2 = jnp.maximum(lin(h1, w2, b2), 0.0)
    return jnp.tanh(lin(h2, w3, b3))


def log_prob_from_mu(mu, actions, log_std):
    std = jnp.clip(jnp.exp(log_std), 0.001, 1.0)
    var = std ** 2
    lp = (-((actions - mu) ** 2) / (2.0 * var)
          - jnp.log(std) - 0.5 * math.log(2.0 * math.pi))
    return lp.sum(axis=-1)


# TODO(synk): torch.distributions.Normal sampling (get_dist().sample()) is not
# implemented as a kernel; log_prob / entropy math is fused above instead.


if __name__ == "__main__":
    key = jax.random.PRNGKey(0)
    k_params, k_state, k_act, k_big, k_bact = jax.random.split(key, 5)

    batch, input_dims, n_actions = 8, 32, 8
    params, raw = init_actor_params(k_params, input_dims, n_actions)
    state = jax.random.normal(k_state, (batch, input_dims), jnp.float32)
    actions = jax.random.normal(k_act, (batch, n_actions), jnp.float32)

    # forward pass kernel
    mu = actor_forward(state, params)
    jax.block_until_ready(mu)
    assert mu.shape == (batch, n_actions)
    # tight check vs bf16-matched reference, loose check vs pure-f32 reference
    assert jnp.max(jnp.abs(mu - actor_forward_ref_bf16(state, raw))) < 1e-3
    assert jnp.max(jnp.abs(mu - actor_forward_ref_f32(state, raw))) < 5e-2

    # fused forward + log-prob kernel (lp packed into spare output lane)
    mu2, lp = actor_get_log_prob(state, actions, params)
    jax.block_until_ready((mu2, lp))
    assert mu2.shape == (batch, n_actions) and lp.shape == (batch,)
    assert jnp.max(jnp.abs(mu2 - mu)) < 1e-5
    lp_ref = log_prob_from_mu(mu2, actions, params.log_std)
    assert jnp.max(jnp.abs(lp - lp_ref)) < 1e-3

    # batch-tiled grid path (grid > 1, weights stay resident, megacore on 2-TC)
    big_B = 256
    big_state = jax.random.normal(k_big, (big_B, input_dims), jnp.float32)
    big_actions = jax.random.normal(k_bact, (big_B, n_actions), jnp.float32)
    mu_big = actor_forward(big_state, params, max_tile_b=128)
    jax.block_until_ready(mu_big)
    assert jnp.max(jnp.abs(mu_big - actor_forward_ref_bf16(big_state, raw))) < 1e-3

    # ragged batch: exercises zero-row padding + min-2-tile split when B >= 16
    mu_r, lp_r = actor_get_log_prob(big_state[:37], big_actions[:37], params)
    jax.block_until_ready((mu_r, lp_r))
    assert jnp.max(jnp.abs(mu_r - actor_forward_ref_bf16(big_state[:37], raw))) < 1e-3
    lp_r_ref = log_prob_from_mu(mu_r, big_actions[:37], params.log_std)
    assert jnp.max(jnp.abs(lp_r - lp_r_ref)) < 1e-3

    ent = get_entropy(state, params)
    jax.block_until_ready(ent)

    print("KERNEL_OK")
</pallas_src>

<mosaic_0001>
module attributes {stable_mosaic.version = 11 : i64} {
  func.func @kernel(%arg0: i32, %arg1: memref<8x32xbf16, #tpu.memory_space<vmem>>, %arg2: memref<312x128xbf16, #tpu.memory_space<vmem>>, %arg3: memref<8x128xf32, #tpu.memory_space<vmem>>) attributes {dimension_semantics = [#tpu.dimension_semantics<parallel>], iteration_bounds = array<i64: 1>, scalar_prefetch = 0 : i64, scratch_operands = 0 : i64, tpu.core_type = #tpu.core_type<tc>, window_params = [{transform_indices = @transform_0, window_bounds = array<i64: 8, 32>}, {pipeline_mode = #tpu.pipeline_mode<synchronous>, transform_indices = @transform_1, window_bounds = array<i64: 312, 128>}, {transform_indices = @transform_2, window_bounds = array<i64: 8, 128>}]} {
    %c0 = arith.constant 0 : index
    %c0_0 = arith.constant 0 : index
    %0 = vector.load %arg1[%c0, %c0_0] : memref<8x32xbf16, #tpu.memory_space<vmem>>, vector<8x32xbf16>
    %c0_1 = arith.constant 0 : index
    %c0_2 = arith.constant 0 : index
    %1 = vector.load %arg2[%c0_1, %c0_2] : memref<312x128xbf16, #tpu.memory_space<vmem>>, vector<32x128xbf16>
    %c32 = arith.constant 32 : index
    %c0_3 = arith.constant 0 : index
    %2 = vector.load %arg2[%c32, %c0_3] : memref<312x128xbf16, #tpu.memory_space<vmem>>, vector<1x128xbf16>
    %3 = arith.extf %2 : vector<1x128xbf16> to vector<1x128xf32>
    %cst = arith.constant dense<0.000000e+00> : vector<8x128xf32>
    %4 = tpu.matmul %0, %1, %cst {dimension_numbers = #tpu.dot_dimension_numbers<[1], [0], [0], [1], [0, 0, 1, 1], [], []>} : vector<8x32xbf16>, vector<32x128xbf16>, vector<8x128xf32> -> vector<8x128xf32>
    %5 = vector.broadcast %3 : vector<1x128xf32> to vector<8x128xf32>
    %6 = arith.addf %4, %5 : vector<8x128xf32>
    %cst_4 = arith.constant 0.000000e+00 : f32
    %7 = vector.broadcast %cst_4 : f32 to vector<8x128xf32>
    %8 = arith.maximumf %6, %7 : vector<8x128xf32>
    %c40 = arith.constant 40 : index
    %c0_5 = arith.constant 0 : index
    %9 = vector.load %arg2[%c40, %c0_5] : memref<312x128xbf16, #tpu.memory_space<vmem>>, vector<128x128xbf16>
    %c168 = arith.constant 168 : index
    %c0_6 = arith.constant 0 : index
    %10 = vector.load %arg2[%c168, %c0_6] : memref<312x128xbf16, #tpu.memory_space<vmem>>, vector<1x128xbf16>
    %11 = arith.extf %10 : vector<1x128xbf16> to vector<1x128xf32>
    %12 = arith.truncf %8 : vector<8x128xf32> to vector<8x128xbf16>
    %cst_7 = arith.constant dense<0.000000e+00> : vector<8x128xf32>
    %13 = tpu.matmul %12, %9, %cst_7 {dimension_numbers = #tpu.dot_dimension_numbers<[1], [0], [0], [1], [0, 0, 1, 1], [], []>} : vector<8x128xbf16>, vector<128x128xbf16>, vector<8x128xf32> -> vector<8x128xf32>
    %14 = vector.broadcast %11 : vector<1x128xf32> to vector<8x128xf32>
    %15 = arith.addf %13, %14 : vector<8x128xf32>
    %cst_8 = arith.constant 0.000000e+00 : f32
    %16 = vector.broadcast %cst_8 : f32 to vector<8x128xf32>
    %17 = arith.maximumf %15, %16 : vector<8x128xf32>
    %c176 = arith.constant 176 : index
    %c0_9 = arith.constant 0 : index
    %18 = vector.load %arg2[%c176, %c0_9] : memref<312x128xbf16, #tpu.memory_space<vmem>>, vector<128x128xbf16>
    %c304 = arith.constant 304 : index
    %c0_10 = arith.constant 0 : index
    %19 = vector.load %arg2[%c304, %c0_10] : memref<312x128xbf16, #tpu.memory_space<vmem>>, vector<1x128xbf16>
    %20 = arith.extf %19 : vector<1x128xbf16> to vector<1x128xf32>
    %21 = arith.truncf %17 : vector<8x128xf32> to vector<8x128xbf16>
    %cst_11 = arith.constant dense<0.000000e+00> : vector<8x128xf32>
    %22 = tpu.matmul %21, %18, %cst_11 {dimension_numbers = #tpu.dot_dimension_numbers<[1], [0], [0], [1], [0, 0, 1, 1], [], []>} : vector<8x128xbf16>, vector<128x128xbf16>, vector<8x128xf32> -> vector<8x128xf32>
    %23 = vector.broadcast %20 : vector<1x128xf32> to vector<8x128xf32>
    %24 = arith.addf %22, %23 : vector<8x128xf32>
    %25 = math.tanh %24 : vector<8x128xf32>
    %c0_12 = arith.constant 0 : index
    %c0_13 = arith.constant 0 : index
    %26 = vector.load %arg3[%c0_12, %c0_13] : memref<8x128xf32, #tpu.memory_space<vmem>>, vector<8x128xf32>
    tpu.vector_store %arg3[%c0_12, %c0_13], %25 {strides = array<i32>} : memref<8x128xf32, #tpu.memory_space<vmem>>, vector<8x128xf32>,
    return
  }
  func.func @transform_0(%arg0: i32) -> (i32, i32) {
    %c0_i32 = arith.constant 0 : i32
    %c0_i32_0 = arith.constant 0 : i32
    return %arg0, %c0_i32 : i32, i32
  }
  func.func @transform_1(%arg0: i32) -> (i32, i32) {
    %c0_i32 = arith.constant 0 : i32
    %c0_i32_0 = arith.constant 0 : i32
    %c0_i32_1 = arith.constant 0 : i32
    return %c0_i32, %c0_i32_0 : i32, i32
  }
  func.func @transform_2(%arg0: i32) -> (i32, i32) {
    %c0_i32 = arith.constant 0 : i32
    %c0_i32_0 = arith.constant 0 : i32
    return %arg0, %c0_i32 : i32, i32
  }
}

</mosaic_0001>

<bundles_post_ra>
// kernel: tpu_custom_call.1
= control target key start
LH: loop header
LB: loop body
LE: loop exit
PB: predicated region body
PF: predicated region fallthrough
CT: control target
= control target key end

     0   :  { %7 = vsyncpa [#allocation3], 0  ;;  %s624_s0 = inlined_call_operand.hbm [shape: bf16[8,32], index: 0, kind: input, shape index: {}]   ;;  %s625_s1 = inlined_call_operand.hbm [shape: bf16[312,128], index: 1, kind: input, shape index: {}]   ;;  %s626_s2 = inlined_call_operand.hbm [shape: f32[8,128], index: 2, kind: output, shape index: {}]  }
   0x1   :  { %8 = vsyncpa [#allocation6], 0 }
   0x2   :  { %9 = vsyncpa [#allocation4], 0  ;;  %s535_s9 = smov [#allocation2]   ;;  %s536_s11 = smov [#allocation5]  }
   0x3   :  { %s16_s10 = sshll.u32 %s535_s9, 4  ;;  %s25_s12 = sshll.u32 %s536_s11, 4  ;;  %s17_s10 = int_to_ptr.vmem [resolvable:$true] %s16_s10  ;;  %s557_s12 = int_to_ptr.vmem [resolvable:$true] %s25_s12 }
   0x4   :  { %s463_s15 = scalar_lea.hbm %s624_s0, 64 }
   0x5   :  { %p464_p0 = scmp.ne.s32.totalorder %s624_s0, %s463_s15  ;;  %p467_p1 = scmp.lt.u32.totalorder %s463_s15, %s624_s0 }
   0x7   :  { %p469_p2 = pnand %p467_p1, %p464_p0 }
   0x9   :  { %472 = shalt.err (!%p469_p2)
}
   0xa   :  { %s473_s20 = scalar_lea.vmem %s17_s10, 64  ;;  %p478_p4 = scmp.lt.s32.totalorder %s17_s10, %s17_s10 }
   0xb   :  { %p474_p3 = scmp.ne.s32.totalorder %s17_s10, %s473_s20  ;;  %p479_p5 = scmp.lt.s32.totalorder %s473_s20, %s473_s20 }
   0xd   :  { %p480_p6 = por %p479_p5, %p478_p4 }
   0xf   :  { %p481_p7 = pnand %p480_p6, %p474_p3 }
  0x11   :  { %484 = shalt.err (!%p481_p7)
}
  0x12   :  { %19 = dma.hbm_to_vmem [thread:$0]  %s624_s0, 64, %s17_s10, [#allocation3]  }
  0x13   :  { %s485_s25 = scalar_lea.hbm %s625_s1, 2496 }
  0x14   :  { %p486_p8 = scmp.ne.s32.totalorder %s625_s1, %s485_s25  ;;  %p489_p9 = scmp.lt.u32.totalorder %s485_s25, %s625_s1 }
  0x16   :  { %p491_p10 = pnand %p489_p9, %p486_p8 }
  0x18   :  { %494 = shalt.err (!%p491_p10)
}
  0x19   :  { %s495_s30 = scalar_lea.vmem %s557_s12, 2496  ;;  %p500_p12 = scmp.lt.s32.totalorder %s557_s12, %s557_s12 }
  0x1a   :  { %p496_p11 = scmp.ne.s32.totalorder %s557_s12, %s495_s30  ;;  %p501_p13 = scmp.lt.s32.totalorder %s495_s30, %s495_s30 }
  0x1c   :  { %p502_p0 = por %p501_p13, %p500_p12 }
  0x1e   :  { %p503_p1 = pnand %p502_p0, %p496_p11 }
  0x20   :  { %506 = shalt.err (!%p503_p1)
}
  0x21   :  { %s537_s0 = smov 64   ;;  %s538_s3 = smov 4  }
  0x22   :  { %31 = dma.hbm_to_vmem [thread:$0]  %s625_s1, 2496, %s557_s12, [#allocation6], %s537_s0, %s537_s0, %s538_s3  }
  0x23   :  { %529 = dma.done.wait [#allocation3], 64  }
  0x24   :  { %530 = vsyncadd [#allocation3], 4294967232 }
  0x25   :  { %531 = dma.done.wait [#allocation6], 2496  }
  0x26   :  { %532 = vsyncadd [#allocation6], 4294964800  ;;  %v539_v0 = vmov 0.0   ;;  %vm540_vm0 = vmmov 0   ;;  %v443_v1 = vld [vmem:[#allocation5] sm:$0xff]   ;;  %v444_v2 = vld [vmem:[#allocation5 + $0x8] sm:$0xff]   ;;  %v46_v18 = vlaneseq }
  0x27   :  { %388 = vmatprep.subr.bf16.mxu0 %v539_v0  ;;  %392 = vmatprep.mubr.msk.bf16.mxu0 %vm540_vm0, %v539_v0  ;;  %v445_v3 = vld [vmem:[#allocation5 + $0x14] sm:$0xff]   ;;  %vm62_vm1 = vcmask 261120   ;;  %v446_v4 = vld [vmem:[#allocation5 + $0x1c] sm:$0xff]   ;;  %v447_v6 = vld [vmem:[#allocation5 + $0x24] sm:$0xff]   ;;  %s541_s1 = smov [#allocation7]  }
  0x28   :  { %396 = vmatprep.subr.bf16.mxu1 %v539_v0  ;;  %412 = vmatprep.mubr.msk.bf16.mxu1 %vm540_vm0, %v539_v0  ;;  %v39_v5 = vld [vmem:[#allocation2] sm:$0xf]  ;;  %v448_v7 = vld [vmem:[#allocation5 + $0x2c] sm:$0xff]   ;;  %v449_v8 = vld [vmem:[#allocation5 + $0x34] sm:$0xff]   ;;  %v47_v19 = vshrl.u32 %v46_v18, 7  ;;  %s338_s6 = sshll.u32 %s541_s1, 4  ;;  %s339_s6 = int_to_ptr.vmem [resolvable:$true] %s338_s6 }
  0x29   :  { %389 = vmatpush3.bf16.msra.mxu0 %v443_v1  ;;  %397 = vmatpush3.bf16.msra.mxu1 %v445_v3  ;;  %v450_v9 = vld [vmem:[#allocation5 + $0x3c] sm:$0xff]   ;;  %v451_v10 = vld [vmem:[#allocation5 + $0x44] sm:$0xff]   ;;  %v452_v11 = vld [vmem:[#allocation5 + $0x4c] sm:$0xff]   ;;  %s507_s7 = scalar_lea.vmem %s339_s6, 128  ;;  %p512_p3 = scmp.lt.s32.totalorder %s339_s6, %s339_s6 }
  0x2a   :  { %390 = vmatprep.subr.bf16.mxu0 %v539_v0  ;;  %398 = vmatprep.subr.bf16.mxu1 %v539_v0  ;;  %v453_v12 = vld [vmem:[#allocation5 + $0x58] sm:$0xff]   ;;  %v454_v13 = vld [vmem:[#allocation5 + $0x60] sm:$0xff]   ;;  %v455_v14 = vld [vmem:[#allocation5 + $0x68] sm:$0xff]   ;;  %v48_v22 = vsub.s32 0, %v47_v19  ;;  %p508_p2 = scmp.ne.s32.totalorder %s339_s6, %s507_s7  ;;  %p513_p4 = scmp.lt.s32.totalorder %s507_s7, %s507_s7 }
  0x2b   :  { %v456_v15 = vld [vmem:[#allocation5 + $0x70] sm:$0xff]   ;;  %v457_v16 = vld [vmem:[#allocation5 + $0x78] sm:$0xff]   ;;  %v458_v17 = vld [vmem:[#allocation5 + $0x80] sm:$0xff]  }
  0x2c   :  { %v44_v20 = vld [vmem:[#allocation5 + $0x10] sm:$0x1]  ;;  %v459_v31 = vld [vmem:[#allocation5 + $0x88] sm:$0xff]   ;;  %v123_v33 = vld [vmem:[#allocation5 + $0x54] sm:$0x1]  ;;  %p514_p5 = por %p513_p4, %p512_p3 }
  0x2d   :  { %391 = vmatpush3.bf16.msra.mxu0 %v444_v2  ;;  %399 = vmatpush3.bf16.msra.mxu1 %v446_v4  ;;  %v45_v21 = vunpack.c.l.bf16 %v44_v20  ;;  %v460_v32 = vld [vmem:[#allocation5 + $0x90] sm:$0xff]   ;;  %v124_v34 = vunpack.c.l.bf16 %v123_v33  ;;  %v235_v43 = vld [vmem:[#allocation5 + $0x98] sm:$0x1] }
  0x2e   :  { %416 = vmatprep.subr.bf16.mxu0 %v539_v0  ;;  %400 = vmatprep.subr.bf16.mxu1 %v539_v0  ;;  %v236_v44 = vunpack.c.l.bf16 %v235_v43  ;;  %p515_p6 = pnand %p514_p5, %p508_p2 }
  0x2f   :  { %v49_v23 = vrot.slane %v45_v21, %v48_v22  ;;  %v129_v35 = vrot.slane %v124_v34, %v48_v22 }
  0x30   :  { %393 = vmatmul.mubr.msk.bf16.vlgmr.msra.gmra.mrb[0].mxu0 %vm62_vm1, %v39_v5  ;;  %v241_v45 = vrot.slane %v236_v44, %v48_v22 }
  0x31   :  { %432 = vmatprep.mubr.msk.bf16.mxu0 %vm540_vm0, %v539_v0  ;;  %401 = vmatpush3.bf16.msra.mxu1 %v447_v6 }
  0x32   :  { %402 = vmatprep.subr.bf16.mxu1 %v539_v0  ;;  %417 = vmatpush3.bf16.msra.mxu0 %v453_v12 }
  0x33   :  { %418 = vmatprep.subr.bf16.mxu0 %v539_v0 }
  0x35   :  { %403 = vmatpush3.bf16.msra.mxu1 %v448_v7 }
  0x36   :  { %404 = vmatprep.subr.bf16.mxu1 %v539_v0  ;;  %419 = vmatpush3.bf16.msra.mxu0 %v454_v13 }
  0x37   :  { %420 = vmatprep.subr.bf16.mxu0 %v539_v0 }
  0x39   :  { %405 = vmatpush3.bf16.msra.mxu1 %v449_v8 }
  0x3a   :  { %406 = vmatprep.subr.bf16.mxu1 %v539_v0  ;;  %421 = vmatpush3.bf16.msra.mxu0 %v455_v14 }
  0x3b   :  { %422 = vmatprep.subr.bf16.mxu0 %v539_v0 }
  0x3d   :  { %407 = vmatpush3.bf16.msra.mxu1 %v450_v9 }
  0x3e   :  { %408 = vmatprep.subr.bf16.mxu1 %v539_v0  ;;  %423 = vmatpush3.bf16.msra.mxu0 %v456_v15 }
  0x3f   :  { %424 = vmatprep.subr.bf16.mxu0 %v539_v0 }
  0x41   :  { %409 = vmatpush3.bf16.msra.mxu1 %v451_v10 }
  0x42   :  { %410 = vmatprep.subr.bf16.mxu1 %v539_v0  ;;  %425 = vmatpush3.bf16.msra.mxu0 %v457_v16 }
  0x43   :  { %426 = vmatprep.subr.bf16.mxu0 %v539_v0 }
  0x45   :  { %411 = vmatpush3.bf16.msra.mxu1 %v452_v11 }
  0x46   :  { %427 = vmatpush3.bf16.msra.mxu0 %v458_v17 }
  0x47   :  { %428 = vmatprep.subr.bf16.mxu0 %v539_v0 }
  0x4a   :  { %429 = vmatpush3.bf16.msra.mxu0 %v459_v31 }
  0x4b   :  { %430 = vmatprep.subr.bf16.mxu0 %v539_v0 }
  0x4e   :  { %431 = vmatpush3.bf16.msra.mxu0 %v460_v32 }
 0x103   :  { %v100_v24 = vpop.f32.mrb[0].mxu0 }
 0x104   :  { %v101_v25 = vadd.f32 %v100_v24, %v49_v23  ;;  %v394_v26 = vpop.f32.mrb[1].mxu0 }
 0x105   :  { %v103_v27 = vpop.f32.mrb[2].mxu0 }
 0x106   :  { %v106_v28 = vmax.f32 %v101_v25, 0.0  ;;  %v395_v29 = vpop.f32.mrb[3].mxu0 }
 0x108   :  { %v125_v30 = vpack.c.bf16 %v106_v28, %v106_v28 }
 0x10a   :  { %413 = vmatmul.mubr.bf16.vlgmr.msra.gmra.mrb[0].mxu1 %v125_v30 }
 0x1dd   :  { %v212_v36 = vpop.f32.mrb[0].mxu1 }
 0x1de   :  { %v213_v37 = vadd.f32 %v212_v36, %v129_v35  ;;  %v414_v38 = vpop.f32.mrb[1].mxu1 }
 0x1df   :  { %v215_v39 = vpop.f32.mrb[2].mxu1 }
 0x1e0   :  { %v218_v40 = vmax.f32 %v213_v37, 0.0  ;;  %v415_v41 = vpop.f32.mrb[3].mxu1 }
 0x1e2   :  { %v237_v42 = vpack.c.bf16 %v218_v40, %v218_v40 }
 0x1e4   :  { %433 = vmatmul.mubr.bf16.vlgmr.msra.gmra.mrb[4].mxu0 %v237_v42 }
 0x2b7   :  { %v324_v46 = vpop.f32.mrb[4].mxu0 }
 0x2b8   :  { %v325_v47 = vadd.f32 %v324_v46, %v241_v45  ;;  %v434_v48 = vpop.f32.mrb[5].mxu0 }
 0x2b9   :  { %v327_v49 = vpop.f32.mrb[6].mxu0 }
 0x2ba   :  { %461 = vtanh.f32 %v325_v47  ;;  %v435_v50 = vpop.f32.mrb[7].mxu0 }
 0x2c4   :  { %v462_v51 = vpop.eup %461 }
 0x2c5   :  { %331 = vst [vmem:[#allocation7] sm:$0xff] %v462_v51 }
 0x2c6   :  { %518 = shalt.err (!%p515_p6)
}
 0x2c7   :  { %s519_s10 = scalar_lea.hbm %s626_s2, 128 }
 0x2c8   :  { %p520_p7 = scmp.ne.s32.totalorder %s626_s2, %s519_s10  ;;  %p523_p8 = scmp.lt.u32.totalorder %s519_s10, %s626_s2 }
 0x2ca   :  { %p525_p9 = pnand %p523_p8, %p520_p7 }
 0x2cc   :  { %528 = shalt.err (!%p525_p9)
}
 0x2cd   :  { %341 = dma.vmem_to_hbm [thread:$0]  %s339_s6, 128, %s626_s2, [#allocation4]  }
 0x2ce   :  { %533 = dma.done.wait [#allocation4], 128  }
 0x2cf   :  { %534 = vsyncadd [#allocation4], 4294967168 }
 0x2d0   :  { %345 = vsyncpa [#allocation3], 1 }
 0x2d1   :  { %346 = vsyncpa [#allocation6], 1 }
 0x2d2   :  { %347 = vsyncpa [#allocation4], 1 }

</bundles_post_ra>
